<compile_context>
chip_gen: v7x
topology: tpu7x:2x2x1
jax: 0.10.0
libtpu: 0.0.40
codegen_flags: <defaults>
</compile_context>

<pallas_src>
import functools

import jax
import jax.numpy as jnp
from jax.experimental import pallas as pl
from jax.experimental.pallas import tpu as pltpu

LOG_STD_MAX = 2.0
LOG_STD_MIN = -5.0
_LOG_STD_A = 0.5 * (LOG_STD_MAX - LOG_STD_MIN)   # 3.5
_LOG_STD_C = LOG_STD_MIN + _LOG_STD_A            # -1.5

_LANE = 128
_SUBLANE_OUT = 16   # bf16 output tile -> keep batch tile 16-row aligned


def _round_up(n, m):
    return ((n + m - 1) // m) * m


# ----------------------------------------------------------------------------
# Kernel
# ----------------------------------------------------------------------------
def actor_kernel(x_ref, w1_ref, b1_ref, w2_ref, b2_ref, wh_ref, bh_ref,
                 out_ref, *, act_dim):
    # fc1 + relu (bf16 MXU inputs, f32 accumulate). Bias + relu + bf16 cast are
    # fused so the f32 intermediate never round-trips through VMEM.
    x = x_ref[...].astype(jnp.bfloat16)
    h1 = jnp.dot(x, w1_ref[...], preferred_element_type=jnp.float32)
    h1 = jnp.maximum(h1 + b1_ref[...], 0.0).astype(jnp.bfloat16)

    # fc2 + relu
    h2 = jnp.dot(h1, w2_ref[...], preferred_element_type=jnp.float32)
    h2 = jnp.maximum(h2 + b2_ref[...], 0.0).astype(jnp.bfloat16)

    # fused heads: columns [0, act_dim) = mean, [act_dim, 2*act_dim) = log_std,
    # remaining columns = lane padding (zero weights; discarded in wrapper).
    z = jnp.dot(h2, wh_ref[...], preferred_element_type=jnp.float32) + bh_ref[...]
    ls = _LOG_STD_A * jnp.tanh(z) + _LOG_STD_C        # folded tanh affine (EUP)
    col = jax.lax.broadcasted_iota(jnp.int32, z.shape, dimension=1)
    # bf16 store: halves the dominant HBM write stream.
    out_ref[...] = jnp.where(col < act_dim, z, ls).astype(out_ref.dtype)


# ----------------------------------------------------------------------------
# Parameter packing (call once): fuse heads, pad to 128 lanes, cast MXU inputs
# ----------------------------------------------------------------------------
def pack_actor_params(params):
    act_dim = params["wm"].shape[1]
    head_pad = _round_up(2 * act_dim, _LANE)
    wh = jnp.concatenate([params["wm"], params["ws"]], axis=1)
    bh = jnp.concatenate([params["bm"], params["bs"]], axis=1)
    wh = jnp.pad(wh, ((0, 0), (0, head_pad - 2 * act_dim)))
    bh = jnp.pad(bh, ((0, 0), (0, head_pad - 2 * act_dim)))
    return dict(
        w1=params["w1"].astype(jnp.bfloat16),
        b1=params["b1"].astype(jnp.float32),
        w2=params["w2"].astype(jnp.bfloat16),
        b2=params["b2"].astype(jnp.float32),
        wh=wh.astype(jnp.bfloat16),
        bh=bh.astype(jnp.float32),
        act_dim=act_dim,
        head_pad=head_pad,
    )


# ----------------------------------------------------------------------------
# Wrapper
# ----------------------------------------------------------------------------
def actor_forward(x, packed, *, block_rows=2048):
    """x: (B, obs_dim) f32 (bf16 also accepted).
    Returns (mean, log_std), each (B, act_dim) f32 (bf16-rounded values)."""
    B, obs_dim = x.shape
    act_dim = packed["act_dim"]
    head_pad = packed["head_pad"]
    hidden = packed["w1"].shape[1]

    # Balanced tiling: split B into num_tiles near-equal 16-row-aligned tiles
    # (worst-case pad <= 15 rows/tile, not a whole tile). Force >= 2 tiles for
    # non-trivial batches so the "parallel" batch axis can use both v7x TCs.
    min_tiles = 2 if B >= 2 * _SUBLANE_OUT else 1
    num_tiles = max(pl.cdiv(B, block_rows), min_tiles)
    tb = _round_up(pl.cdiv(B, num_tiles), _SUBLANE_OUT)
    b_pad = num_tiles * tb
    if b_pad != B:
        x = jnp.pad(x, ((0, b_pad - B), (0, 0)))
    grid = (num_tiles,)

    def resident(shape):
        # Grid-invariant weights/biases: stay VMEM-resident across the grid.
        return pl.BlockSpec(shape, lambda i: (0, 0))

    x_bytes = x.dtype.itemsize
    flops = 2 * b_pad * (obs_dim * hidden + hidden * hidden + hidden * head_pad)
    bytes_accessed = (
        b_pad * obs_dim * x_bytes
        + (packed["w1"].size + packed["w2"].size + packed["wh"].size) * 2
        + (packed["b1"].size + packed["b2"].size + packed["bh"].size) * 4
        + b_pad * head_pad * 2)                                   # bf16 output
    cost = pl.CostEstimate(flops=flops,
                           transcendentals=b_pad * head_pad,
                           bytes_accessed=bytes_accessed)

    out = pl.pallas_call(
        functools.partial(actor_kernel, act_dim=act_dim),
        out_shape=jax.ShapeDtypeStruct((b_pad, head_pad), jnp.bfloat16),
        grid=grid,
        in_specs=[
            pl.BlockSpec((tb, obs_dim), lambda i: (i, 0)),          # x tile
            resident((obs_dim, hidden)), resident((1, hidden)),     # fc1
            resident((hidden, hidden)), resident((1, hidden)),      # fc2
            resident((hidden, head_pad)), resident((1, head_pad)),  # fused heads
        ],
        out_specs=pl.BlockSpec((tb, head_pad), lambda i: (i, 0)),
        compiler_params=pltpu.CompilerParams(
            dimension_semantics=("parallel",),
            vmem_limit_bytes=32 * 1024 * 1024),
        cost_estimate=cost,
    )(x, packed["w1"], packed["b1"], packed["w2"], packed["b2"],
      packed["wh"], packed["bh"])

    mean = out[:B, :act_dim].astype(jnp.float32)
    log_std = out[:B, act_dim:2 * act_dim].astype(jnp.float32)
    return mean, log_std


# ----------------------------------------------------------------------------
# Reference / init helpers
# ----------------------------------------------------------------------------
def init_params(key, obs_dim, act_dim, hidden=256):
    """Deterministic synthetic init (uniform, PyTorch-Linear-like fan-in scale).
    Weights stored (in_features, out_features) so the kernel computes x @ W + b."""
    def linear(k, fan_in, fan_out):
        kw, kb = jax.random.split(k)
        bound = 1.0 / jnp.sqrt(float(fan_in))
        w = jax.random.uniform(kw, (fan_in, fan_out), jnp.float32, -bound, bound)
        b = jax.random.uniform(kb, (1, fan_out), jnp.float32, -bound, bound)
        return w, b

    k1, k2, k3, k4 = jax.random.split(key, 4)
    w1, b1 = linear(k1, obs_dim, hidden)
    w2, b2 = linear(k2, hidden, hidden)
    wm, bm = linear(k3, hidden, act_dim)
    ws, bs = linear(k4, hidden, act_dim)
    return dict(w1=w1, b1=b1, w2=w2, b2=b2, wm=wm, bm=bm, ws=ws, bs=bs)


def actor_forward_ref(x, params):
    """Pure-f32 JAX reference (matches the PyTorch forward exactly)."""
    h1 = jnp.maximum(x @ params["w1"] + params["b1"], 0.0)
    h2 = jnp.maximum(h1 @ params["w2"] + params["b2"], 0.0)
    mean = h2 @ params["wm"] + params["bm"]
    ls = jnp.tanh(h2 @ params["ws"] + params["bs"])
    ls = LOG_STD_MIN + 0.5 * (LOG_STD_MAX - LOG_STD_MIN) * (ls + 1.0)
    return mean, ls


def actor_forward_ref_bf16(x, params):
    """Reference mimicking the kernel's bf16-input matmuls and bf16 output."""
    bf = jnp.bfloat16
    h1 = jnp.dot(x.astype(bf), params["w1"].astype(bf),
                 preferred_element_type=jnp.float32) + params["b1"]
    h1 = jnp.maximum(h1, 0.0)
    h2 = jnp.dot(h1.astype(bf), params["w2"].astype(bf),
                 preferred_element_type=jnp.float32) + params["b2"]
    h2 = jnp.maximum(h2, 0.0)
    mean = jnp.dot(h2.astype(bf), params["wm"].astype(bf),
                   preferred_element_type=jnp.float32) + params["bm"]
    z = jnp.dot(h2.astype(bf), params["ws"].astype(bf),
                preferred_element_type=jnp.float32) + params["bs"]
    ls = _LOG_STD_A * jnp.tanh(z) + _LOG_STD_C
    return (mean.astype(bf).astype(jnp.float32),
            ls.astype(bf).astype(jnp.float32))


if __name__ == "__main__":
    key = jax.random.PRNGKey(0)
    kx, kp = jax.random.split(key)

    batch, obs_dim, act_dim = 8, 16, 4   # small, forward-consistent shapes
    x = jax.random.normal(kx, (batch, obs_dim), jnp.float32)
    raw = init_params(kp, obs_dim, act_dim)
    packed = pack_actor_params(raw)

    mean, log_std = actor_forward(x, packed)
    jax.block_until_ready((mean, log_std))
    assert mean.shape == (batch, act_dim) and log_std.shape == (batch, act_dim)

    # bf16 MXU inputs + bf16 output vs pure-f32 reference: loose tolerance.
    mean_f32, log_std_f32 = actor_forward_ref(x, raw)
    assert jnp.allclose(mean, mean_f32, atol=5e-2, rtol=5e-2)
    assert jnp.allclose(log_std, log_std_f32, atol=5e-2, rtol=5e-2)
    # Structural check vs a reference with the same bf16 casts: tighter.
    mean_bf, log_std_bf = actor_forward_ref_bf16(x, raw)
    assert jnp.allclose(mean, mean_bf, atol=2e-2, rtol=2e-2)
    assert jnp.allclose(log_std, log_std_bf, atol=2e-2, rtol=2e-2)

    # Exercise the multi-tile / balanced ragged-batch path
    # (B=300, block_rows=128 -> 3 tiles of 112 rows, only 36 padded rows).
    batch2 = 300
    x2 = jax.random.normal(jax.random.PRNGKey(1), (batch2, obs_dim), jnp.float32)
    mean2, log_std2 = actor_forward(x2, packed, block_rows=128)
    jax.block_until_ready((mean2, log_std2))
    assert mean2.shape == (batch2, act_dim) and log_std2.shape == (batch2, act_dim)
    m2_bf, ls2_bf = actor_forward_ref_bf16(x2, raw)
    assert jnp.allclose(mean2, m2_bf, atol=2e-2, rtol=2e-2)
    assert jnp.allclose(log_std2, ls2_bf, atol=2e-2, rtol=2e-2)

    # TODO(synk): get_action's Normal.rsample / log_prob sampling path is
    # stochastic host-side glue and is not part of the forward() hot path.

    print("KERNEL_OK")
</pallas_src>

<mosaic_0001>
module attributes {stable_mosaic.version = 11 : i64} {
  func.func @actor_kernel(%arg0: i32, %arg1: memref<16x16xf32, #tpu.memory_space<vmem>>, %arg2: memref<16x256xbf16, #tpu.memory_space<vmem>>, %arg3: memref<1x256xf32, #tpu.memory_space<vmem>>, %arg4: memref<256x256xbf16, #tpu.memory_space<vmem>>, %arg5: memref<1x256xf32, #tpu.memory_space<vmem>>, %arg6: memref<256x128xbf16, #tpu.memory_space<vmem>>, %arg7: memref<1x128xf32, #tpu.memory_space<vmem>>, %arg8: memref<16x128xbf16, #tpu.memory_space<vmem>>) attributes {dimension_semantics = [#tpu.dimension_semantics<parallel>], iteration_bounds = array<i64: 1>, scalar_prefetch = 0 : i64, scratch_operands = 0 : i64, tpu.core_type = #tpu.core_type<tc>, window_params = [{transform_indices = @transform_0, window_bounds = array<i64: 16, 16>}, {pipeline_mode = #tpu.pipeline_mode<synchronous>, transform_indices = @transform_1, window_bounds = array<i64: 16, 256>}, {pipeline_mode = #tpu.pipeline_mode<synchronous>, transform_indices = @transform_2, window_bounds = array<i64: 1, 256>}, {pipeline_mode = #tpu.pipeline_mode<synchronous>, transform_indices = @transform_3, window_bounds = array<i64: 256, 256>}, {pipeline_mode = #tpu.pipeline_mode<synchronous>, transform_indices = @transform_4, window_bounds = array<i64: 1, 256>}, {pipeline_mode = #tpu.pipeline_mode<synchronous>, transform_indices = @transform_5, window_bounds = array<i64: 256, 128>}, {pipeline_mode = #tpu.pipeline_mode<synchronous>, transform_indices = @transform_6, window_bounds = array<i64: 1, 128>}, {transform_indices = @transform_7, window_bounds = array<i64: 16, 128>}]} {
    %c0 = arith.constant 0 : index
    %c0_0 = arith.constant 0 : index
    %0 = vector.load %arg1[%c0, %c0_0] : memref<16x16xf32, #tpu.memory_space<vmem>>, vector<16x16xf32>
    %1 = arith.truncf %0 : vector<16x16xf32> to vector<16x16xbf16>
    %c0_1 = arith.constant 0 : index
    %c0_2 = arith.constant 0 : index
    %2 = vector.load %arg2[%c0_1, %c0_2] : memref<16x256xbf16, #tpu.memory_space<vmem>>, vector<16x256xbf16>
    %cst = arith.constant dense<0.000000e+00> : vector<16x256xf32>
    %3 = tpu.matmul %1, %2, %cst {dimension_numbers = #tpu.dot_dimension_numbers<[1], [0], [0], [1], [0, 0, 1, 1], [], []>} : vector<16x16xbf16>, vector<16x256xbf16>, vector<16x256xf32> -> vector<16x256xf32>
    %c0_3 = arith.constant 0 : index
    %c0_4 = arith.constant 0 : index
    %4 = vector.load %arg3[%c0_3, %c0_4] : memref<1x256xf32, #tpu.memory_space<vmem>>, vector<1x256xf32>
    %5 = vector.broadcast %4 : vector<1x256xf32> to vector<16x256xf32>
    %6 = arith.addf %3, %5 : vector<16x256xf32>
    %cst_5 = arith.constant 0.000000e+00 : f32
    %7 = vector.broadcast %cst_5 : f32 to vector<16x256xf32>
    %8 = arith.maximumf %6, %7 : vector<16x256xf32>
    %9 = arith.truncf %8 : vector<16x256xf32> to vector<16x256xbf16>
    %c0_6 = arith.constant 0 : index
    %c0_7 = arith.constant 0 : index
    %10 = vector.load %arg4[%c0_6, %c0_7] : memref<256x256xbf16, #tpu.memory_space<vmem>>, vector<256x256xbf16>
    %cst_8 = arith.constant dense<0.000000e+00> : vector<16x256xf32>
    %11 = tpu.matmul %9, %10, %cst_8 {dimension_numbers = #tpu.dot_dimension_numbers<[1], [0], [0], [1], [0, 0, 1, 1], [], []>} : vector<16x256xbf16>, vector<256x256xbf16>, vector<16x256xf32> -> vector<16x256xf32>
    %c0_9 = arith.constant 0 : index
    %c0_10 = arith.constant 0 : index
    %12 = vector.load %arg5[%c0_9, %c0_10] : memref<1x256xf32, #tpu.memory_space<vmem>>, vector<1x256xf32>
    %13 = vector.broadcast %12 : vector<1x256xf32> to vector<16x256xf32>
    %14 = arith.addf %11, %13 : vector<16x256xf32>
    %cst_11 = arith.constant 0.000000e+00 : f32
    %15 = vector.broadcast %cst_11 : f32 to vector<16x256xf32>
    %16 = arith.maximumf %14, %15 : vector<16x256xf32>
    %17 = arith.truncf %16 : vector<16x256xf32> to vector<16x256xbf16>
    %c0_12 = arith.constant 0 : index
    %c0_13 = arith.constant 0 : index
    %18 = vector.load %arg6[%c0_12, %c0_13] : memref<256x128xbf16, #tpu.memory_space<vmem>>, vector<256x128xbf16>
    %cst_14 = arith.constant dense<0.000000e+00> : vector<16x128xf32>
    %19 = tpu.matmul %17, %18, %cst_14 {dimension_numbers = #tpu.dot_dimension_numbers<[1], [0], [0], [1], [0, 0, 1, 1], [], []>} : vector<16x256xbf16>, vector<256x128xbf16>, vector<16x128xf32> -> vector<16x128xf32>
    %c0_15 = arith.constant 0 : index
    %c0_16 = arith.constant 0 : index
    %20 = vector.load %arg7[%c0_15, %c0_16] : memref<1x128xf32, #tpu.memory_space<vmem>>, vector<1x128xf32>
    %21 = vector.broadcast %20 : vector<1x128xf32> to vector<16x128xf32>
    %22 = arith.addf %19, %21 : vector<16x128xf32>
    %23 = math.tanh %22 : vector<16x128xf32>
    %cst_17 = arith.constant 3.500000e+00 : f32
    %24 = vector.broadcast %cst_17 : f32 to vector<16x128xf32>
    %25 = arith.mulf %24, %23 : vector<16x128xf32>
    %cst_18 = arith.constant -1.500000e+00 : f32
    %26 = vector.broadcast %cst_18 : f32 to vector<16x128xf32>
    %27 = arith.addf %25, %26 : vector<16x128xf32>
    %28 = tpu.iota {dimensions = array<i32: 1>} : vector<16x128xi32>
    %c4_i32 = arith.constant 4 : i32
    %29 = vector.broadcast %c4_i32 : i32 to vector<16x128xi32>
    %30 = arith.cmpi slt, %28, %29 : vector<16x128xi32>
    %31 = arith.select %30, %22, %27 : vector<16x128xi1>, vector<16x128xf32>
    %32 = arith.truncf %31 : vector<16x128xf32> to vector<16x128xbf16>
    %c0_19 = arith.constant 0 : index
    %c0_20 = arith.constant 0 : index
    %33 = vector.load %arg8[%c0_19, %c0_20] : memref<16x128xbf16, #tpu.memory_space<vmem>>, vector<16x128xbf16>
    tpu.vector_store %arg8[%c0_19, %c0_20], %32 {strides = array<i32>} : memref<16x128xbf16, #tpu.memory_space<vmem>>, vector<16x128xbf16>,
    return
  }
  func.func @transform_0(%arg0: i32) -> (i32, i32) {
    %c0_i32 = arith.constant 0 : i32
    %c0_i32_0 = arith.constant 0 : i32
    return %arg0, %c0_i32 : i32, i32
  }
  func.func @transform_1(%arg0: i32) -> (i32, i32) {
    %c0_i32 = arith.constant 0 : i32
    %c0_i32_0 = arith.constant 0 : i32
    %c0_i32_1 = arith.constant 0 : i32
    return %c0_i32, %c0_i32_0 : i32, i32
  }
  func.func @transform_2(%arg0: i32) -> (i32, i32) {
    %c0_i32 = arith.constant 0 : i32
    %c0_i32_0 = arith.constant 0 : i32
    %c0_i32_1 = arith.constant 0 : i32
    return %c0_i32, %c0_i32_0 : i32, i32
  }
  func.func @transform_3(%arg0: i32) -> (i32, i32) {
    %c0_i32 = arith.constant 0 : i32
    %c0_i32_0 = arith.constant 0 : i32
    %c0_i32_1 = arith.constant 0 : i32
    return %c0_i32, %c0_i32_0 : i32, i32
  }
  func.func @transform_4(%arg0: i32) -> (i32, i32) {
    %c0_i32 = arith.constant 0 : i32
    %c0_i32_0 = arith.constant 0 : i32
    %c0_i32_1 = arith.constant 0 : i32
    return %c0_i32, %c0_i32_0 : i32, i32
  }
  func.func @transform_5(%arg0: i32) -> (i32, i32) {
    %c0_i32 = arith.constant 0 : i32
    %c0_i32_0 = arith.constant 0 : i32
    %c0_i32_1 = arith.constant 0 : i32
    return %c0_i32, %c0_i32_0 : i32, i32
  }
  func.func @transform_6(%arg0: i32) -> (i32, i32) {
    %c0_i32 = arith.constant 0 : i32
    %c0_i32_0 = arith.constant 0 : i32
    %c0_i32_1 = arith.constant 0 : i32
    return %c0_i32, %c0_i32_0 : i32, i32
  }
  func.func @transform_7(%arg0: i32) -> (i32, i32) {
    %c0_i32 = arith.constant 0 : i32
    %c0_i32_0 = arith.constant 0 : i32
    return %arg0, %c0_i32 : i32, i32
  }
}

</mosaic_0001>

<bundles_post_ra>
// kernel: tpu_custom_call.1
= control target key start
LH: loop header
LB: loop body
LE: loop exit
PB: predicated region body
PF: predicated region fallthrough
CT: control target
= control target key end

     0   :  { %12 = vsyncpa [#allocation3], 0  ;;  %s1064_s0 = inlined_call_operand.hbm [shape: f32[16,16], index: 0, kind: input, shape index: {}]   ;;  %s1065_s1 = inlined_call_operand.hbm [shape: bf16[16,256], index: 1, kind: input, shape index: {}]   ;;  %s1066_s2 = inlined_call_operand.vmem [shape: f32[1,256], index: 2, kind: input, shape index: {}]   ;;  %s1067_s3 = inlined_call_operand.hbm [shape: bf16[256,256], index: 3, kind: input, shape index: {}]   ;;  %s1068_s4 = inlined_call_operand.vmem [shape: f32[1,256], index: 4, kind: input, shape index: {}]   ;;  %s1069_s5 = inlined_call_operand.hbm [shape: bf16[256,128], index: 5, kind: input, shape index: {}]   ;;  %s1070_s6 = inlined_call_operand.vmem [shape: f32[1,128], index: 6, kind: input, shape index: {}]   ;;  %s1071_s7 = inlined_call_operand.hbm [shape: bf16[16,128], index: 7, kind: output, shape index: {}]  }
   0x1   :  { %13 = vsyncpa [#allocation6], 0 }
   0x2   :  { %14 = vsyncpa [#allocation9], 0 }
   0x3   :  { %15 = vsyncpa [#allocation4], 0  ;;  %s914_s24 = smov [#allocation5]   ;;  %s915_s26 = smov [#allocation2]  }
   0x4   :  { %s33_s25 = sshll.u32 %s914_s24, 4  ;;  %s21_s27 = sshll.u32 %s915_s26, 4  ;;  %s34_s25 = int_to_ptr.vmem [resolvable:$true] %s33_s25  ;;  %s964_s27 = int_to_ptr.vmem [resolvable:$true] %s21_s27 }
   0x5   :  { %s796_s30 = scalar_lea.hbm %s1065_s1, 256 }
   0x6   :  { %p797_p0 = scmp.ne.s32.totalorder %s1065_s1, %s796_s30  ;;  %p800_p1 = scmp.lt.u32.totalorder %s796_s30, %s1065_s1 }
   0x8   :  { %p802_p2 = pnand %p800_p1, %p797_p0 }
   0xa   :  { %805 = shalt.err (!%p802_p2)
}
   0xb   :  { %s806_s12 = scalar_lea.vmem %s34_s25, 256  ;;  %p811_p4 = scmp.lt.s32.totalorder %s34_s25, %s34_s25 }
   0xc   :  { %p807_p3 = scmp.ne.s32.totalorder %s34_s25, %s806_s12  ;;  %p812_p5 = scmp.lt.s32.totalorder %s806_s12, %s806_s12 }
   0xe   :  { %p813_p6 = por %p812_p5, %p811_p4 }
  0x10   :  { %p814_p7 = pnand %p813_p6, %p807_p3 }
  0x12   :  { %817 = shalt.err (!%p814_p7)
}
  0x13   :  { %s916_s13 = smov 128   ;;  %s917_s14 = smov 8  }
  0x14   :  { %39 = dma.hbm_to_vmem [thread:$0]  %s1065_s1, 256, %s34_s25, [#allocation6], %s916_s13, %s916_s13, %s917_s14  }
  0x15   :  { %s818_s19 = scalar_lea.hbm %s1064_s0, 256 }
  0x16   :  { %p819_p8 = scmp.ne.s32.totalorder %s1064_s0, %s818_s19  ;;  %p822_p9 = scmp.lt.u32.totalorder %s818_s19, %s1064_s0 }
  0x18   :  { %p824_p10 = pnand %p822_p9, %p819_p8 }
  0x1a   :  { %827 = shalt.err (!%p824_p10)
}
  0x1b   :  { %s828_s24 = scalar_lea.vmem %s964_s27, 256  ;;  %p833_p12 = scmp.lt.s32.totalorder %s964_s27, %s964_s27 }
  0x1c   :  { %p829_p11 = scmp.ne.s32.totalorder %s964_s27, %s828_s24  ;;  %p834_p13 = scmp.lt.s32.totalorder %s828_s24, %s828_s24 }
  0x1e   :  { %p835_p0 = por %p834_p13, %p833_p12 }
  0x20   :  { %p836_p1 = pnand %p835_p0, %p829_p11 }
  0x22   :  { %839 = shalt.err (!%p836_p1)
}
  0x23   :  { %27 = dma.hbm_to_vmem [thread:$0]  %s1064_s0, 256, %s964_s27, [#allocation3], %s916_s13, %s916_s13, %s917_s14  }
  0x24   :  { %s918_s26 = smov [#allocation7]   ;;  %s919_s29 = smov [#allocation8]  }
  0x25   :  { %s47_s28 = sshll.u32 %s918_s26, 4  ;;  %s61_s30 = sshll.u32 %s919_s29, 4  ;;  %s48_s28 = int_to_ptr.vmem [resolvable:$true] %s47_s28  ;;  %s1001_s30 = int_to_ptr.vmem [resolvable:$true] %s61_s30 }
  0x26   :  { %s840_s10 = scalar_lea.hbm %s1067_s3, 4096 }
  0x27   :  { %p841_p2 = scmp.ne.s32.totalorder %s1067_s3, %s840_s10  ;;  %p844_p3 = scmp.lt.u32.totalorder %s840_s10, %s1067_s3 }
  0x29   :  { %p846_p4 = pnand %p844_p3, %p841_p2 }
  0x2b   :  { %849 = shalt.err (!%p846_p4)
}
  0x2c   :  { %s850_s0 = scalar_lea.vmem %s48_s28, 4096  ;;  %p855_p6 = scmp.lt.s32.totalorder %s48_s28, %s48_s28 }
  0x2d   :  { %p851_p5 = scmp.ne.s32.totalorder %s48_s28, %s850_s0  ;;  %p856_p7 = scmp.lt.s32.totalorder %s850_s0, %s850_s0 }
  0x2f   :  { %p857_p8 = por %p856_p7, %p855_p6 }
  0x31   :  { %p858_p9 = pnand %p857_p8, %p851_p5 }
  0x33   :  { %861 = shalt.err (!%p858_p9)
}
  0x34   :  { %53 = dma.hbm_to_vmem [thread:$0]  %s1067_s3, 4096, %s48_s28, [#allocation6], %s916_s13, %s916_s13, %s917_s14  }
  0x35   :  { %s862_s20 = scalar_lea.hbm %s1069_s5, 2048 }
  0x36   :  { %p863_p10 = scmp.ne.s32.totalorder %s1069_s5, %s862_s20  ;;  %p866_p11 = scmp.lt.u32.totalorder %s862_s20, %s1069_s5 }
  0x38   :  { %p868_p12 = pnand %p866_p11, %p863_p10 }
  0x3a   :  { %871 = shalt.err (!%p868_p12)
}
  0x3b   :  { %s872_s1 = scalar_lea.vmem %s1001_s30, 2048  ;;  %p877_p0 = scmp.lt.s32.totalorder %s1001_s30, %s1001_s30 }
  0x3c   :  { %p873_p13 = scmp.ne.s32.totalorder %s1001_s30, %s872_s1  ;;  %p878_p1 = scmp.lt.s32.totalorder %s872_s1, %s872_s1 }
  0x3e   :  { %p879_p2 = por %p878_p1, %p877_p0 }
  0x40   :  { %p880_p3 = pnand %p879_p2, %p873_p13 }
  0x42   :  { %883 = shalt.err (!%p880_p3)
}
  0x43   :  { %s920_s3 = smov 64   ;;  %s921_s13 = smov 4  }
  0x44   :  { %67 = dma.hbm_to_vmem [thread:$0]  %s1069_s5, 2048, %s1001_s30, [#allocation9], %s920_s3, %s920_s3, %s921_s13  }
  0x45   :  { %906 = dma.done.wait [#allocation3], 256  }
  0x46   :  { %907 = vsyncadd [#allocation3], 4294967040 }
  0x47   :  { %908 = dma.done.wait [#allocation6], 4352  }
  0x48   :  { %909 = vsyncadd [#allocation6], 4294962944 }
  0x49   :  { %910 = dma.done.wait [#allocation9], 2048  }
  0x4a   :  { %911 = vsyncadd [#allocation9], 4294965248  ;;  %v922_v0 = vmov 0   ;;  %v725_v1 = vld [vmem:[#allocation5 + $0x4] ss:$8 sps:$4 sm:$0xff]   ;;  %v83_v3 = vld [vmem:[#allocation2] sm:$0xff]  ;;  %v90_v49 = vlaneseq }
  0x4b   :  { %146 = vmatprep.mubr.bf16.mxu0 %v922_v0  ;;  %v727_v2 = vld [vmem:[#allocation5] ss:$8 sps:$4 sm:$0xff]   ;;  %v84_v4 = vld [vmem:[#allocation2 + $0x8] sm:$0xff]  ;;  %114 = vmatprep.subr.bf16.mxu0 %v725_v1  ;;  %vm110_vm0 = vcmask 130048   ;;  %v731_v8 = vld [vmem:[#allocation7 + $0x14] ss:$8 sps:$4 sm:$0xff]  }
  0x4c   :  { %v85_v5 = vpack.c.bf16 %v84_v4, %v83_v3  ;;  %v728_v6 = vld [vmem:[#allocation7 + $0x4] ss:$8 sps:$4 sm:$0xff]   ;;  %115 = vmatpush1.bf16.msra.mxu0 %v727_v2  ;;  %v730_v7 = vld [vmem:[#allocation7] ss:$8 sps:$4 sm:$0xff]   ;;  %v733_v9 = vld [vmem:[#allocation7 + $0x10] ss:$8 sps:$4 sm:$0xff]  }
  0x4d   :  { %367 = vmatprep.subr.bf16.mxu1 %v728_v6  ;;  %v734_v10 = vld [vmem:[#allocation7 + $0x24] ss:$8 sps:$4 sm:$0xff]   ;;  %v736_v11 = vld [vmem:[#allocation7 + $0x20] ss:$8 sps:$4 sm:$0xff]   ;;  %v737_v12 = vld [vmem:[#allocation7 + $0x34] ss:$8 sps:$4 sm:$0xff]  }
  0x4e   :  { %368 = vmatpush1.bf16.msra.mxu1 %v730_v7  ;;  %v739_v13 = vld [vmem:[#allocation7 + $0x30] ss:$8 sps:$4 sm:$0xff]   ;;  %v740_v14 = vld [vmem:[#allocation7 + $0x44] ss:$8 sps:$4 sm:$0xff]   ;;  %v742_v15 = vld [vmem:[#allocation7 + $0x40] ss:$8 sps:$4 sm:$0xff]  }
  0x4f   :  { %634 = vmatmul.mubr.msk.bf16.vlgmr.msra.gmra.mrb[0].mxu0 %vm110_vm0, %v85_v5  ;;  %369 = vmatprep.subr.bf16.mxu1 %v731_v8  ;;  %v743_v16 = vld [vmem:[#allocation7 + $0x54] ss:$8 sps:$4 sm:$0xff]   ;;  %v745_v17 = vld [vmem:[#allocation7 + $0x50] ss:$8 sps:$4 sm:$0xff]   ;;  %v746_v18 = vld [vmem:[#allocation7 + $0x64] ss:$8 sps:$4 sm:$0xff]  }
  0x50   :  { %v748_v19 = vld [vmem:[#allocation7 + $0x60] ss:$8 sps:$4 sm:$0xff]   ;;  %v749_v20 = vld [vmem:[#allocation7 + $0x74] ss:$8 sps:$4 sm:$0xff]   ;;  %v751_v21 = vld [vmem:[#allocation7 + $0x70] ss:$8 sps:$4 sm:$0xff]  }
  0x51   :  { %v752_v22 = vld [vmem:[#allocation7 + $0x84] ss:$8 sps:$4 sm:$0xff]   ;;  %v754_v23 = vld [vmem:[#allocation7 + $0x80] ss:$8 sps:$4 sm:$0xff]   ;;  %v755_v24 = vld [vmem:[#allocation7 + $0x94] ss:$8 sps:$4 sm:$0xff]  }
  0x52   :  { %370 = vmatpush1.bf16.msra.mxu1 %v733_v9  ;;  %v757_v25 = vld [vmem:[#allocation7 + $0x90] ss:$8 sps:$4 sm:$0xff]   ;;  %v758_v26 = vld [vmem:[#allocation7 + $0xa4] ss:$8 sps:$4 sm:$0xff]   ;;  %v760_v27 = vld [vmem:[#allocation7 + $0xa0] ss:$8 sps:$4 sm:$0xff]  }
  0x53   :  { %371 = vmatprep.subr.bf16.mxu1 %v734_v10  ;;  %v761_v28 = vld [vmem:[#allocation7 + $0xb4] ss:$8 sps:$4 sm:$0xff]   ;;  %v763_v29 = vld [vmem:[#allocation7 + $0xb0] ss:$8 sps:$4 sm:$0xff]   ;;  %v764_v30 = vld [vmem:[#allocation7 + $0xc4] ss:$8 sps:$4 sm:$0xff]  }
  0x54   :  { %v766_v31 = vld [vmem:[#allocation7 + $0xc0] ss:$8 sps:$4 sm:$0xff]   ;;  %v767_v32 = vld [vmem:[#allocation7 + $0xd4] ss:$8 sps:$4 sm:$0xff]   ;;  %v769_v33 = vld [vmem:[#allocation7 + $0xd0] ss:$8 sps:$4 sm:$0xff]  }
  0x55   :  { %v770_v34 = vld [vmem:[#allocation7 + $0xe4] ss:$8 sps:$4 sm:$0xff]   ;;  %v772_v35 = vld [vmem:[#allocation7 + $0xe0] ss:$8 sps:$4 sm:$0xff]   ;;  %v773_v36 = vld [vmem:[#allocation7 + $0xf4] ss:$8 sps:$4 sm:$0xff]  }
  0x56   :  { %372 = vmatpush1.bf16.msra.mxu1 %v736_v11  ;;  %v775_v37 = vld [vmem:[#allocation7 + $0xf0] ss:$8 sps:$4 sm:$0xff]   ;;  %v776_v38 = vld [vmem:[#allocation8 + $0x40] sm:$0xff]   ;;  %v778_v40 = vld [vmem:[#allocation8 + $0x48] sm:$0xff]   ;;  %v91_v50 = vshrl.u32 %v90_v49, 7  ;;  %s923_s30 = smov [#allocation10]  }
  0x57   :  { %373 = vmatprep.subr.bf16.mxu1 %v737_v12  ;;  %v777_v39 = vld [vmem:[#allocation8] sm:$0xff]   ;;  %693 = vmatprep.subr.bf16.mxu0 %v776_v38  ;;  %v779_v41 = vld [vmem:[#allocation8 + $0x8] sm:$0xff]   ;;  %v780_v42 = vld [vmem:[#allocation8 + $0x50] sm:$0xff]   ;;  %v599_v38 = vand.u32 127, %v90_v49 }
  0x58   :  { %694 = vmatpush3.bf16.msra.mxu0 %v777_v39  ;;  %v781_v43 = vld [vmem:[#allocation8 + $0x10] sm:$0xff]   ;;  %v782_v44 = vld [vmem:[#allocation8 + $0x58] sm:$0xff]   ;;  %v784_v46 = vld [vmem:[#allocation8 + $0x60] sm:$0xff]   ;;  %v92_v51 = vsub.s32 0, %v91_v50  ;;  %v96_v53 = vsub.s32 1, %v91_v50 }
  0x59   :  { %695 = vmatprep.subr.bf16.mxu0 %v778_v40  ;;  %v783_v45 = vld [vmem:[#allocation8 + $0x18] sm:$0xff]   ;;  %v785_v47 = vld [vmem:[#allocation8 + $0x20] sm:$0xff]   ;;  %v786_v48 = vld [vmem:[#allocation8 + $0x68] sm:$0xff]   ;;  %vm600_vm1 = vcmp.lt.s32.totalorder %v599_v38, 4 }
  0x5a   :  { %374 = vmatpush1.bf16.msra.mxu1 %v739_v13  ;;  %v88_v52 = vld [vmem:[%s1066_s2] sm:$0x3]  ;;  %v787_v6 = vld [vmem:[#allocation8 + $0x28] sm:$0xff]   ;;  %v788_v7 = vld [vmem:[#allocation8 + $0x70] sm:$0xff]  }
  0x5b   :  { %375 = vmatprep.subr.bf16.mxu1 %v740_v14  ;;  %v93_v54 = vrot.slane %v88_v52, %v92_v51  ;;  %v97_v55 = vrot.slane %v88_v52, %v96_v53  ;;  %v789_v8 = vld [vmem:[#allocation8 + $0x30] sm:$0xff]   ;;  %v790_v9 = vld [vmem:[#allocation8 + $0x78] sm:$0xff]   ;;  %v195_v11 = vld [vmem:[%s1068_s4] sm:$0x3] }
  0x5c   :  { %696 = vmatpush3.bf16.msra.mxu0 %v779_v41  ;;  %v791_v10 = vld [vmem:[#allocation8 + $0x38] sm:$0xff]   ;;  %v200_v12 = vrot.slane %v195_v11, %v92_v51  ;;  %v204_v13 = vrot.slane %v195_v11, %v96_v53 }
  0x5d   :  { %697 = vmatprep.subr.bf16.mxu0 %v780_v42 }
  0x5e   :  { %376 = vmatpush1.bf16.msra.mxu1 %v742_v15 }
  0x5f   :  { %377 = vmatprep.subr.bf16.mxu1 %v743_v16 }
  0x60   :  { %698 = vmatpush3.bf16.msra.mxu0 %v781_v43 }
  0x61   :  { %699 = vmatprep.subr.bf16.mxu0 %v782_v44 }
  0x62   :  { %378 = vmatpush1.bf16.msra.mxu1 %v745_v17 }
  0x63   :  { %379 = vmatprep.subr.bf16.mxu1 %v746_v18 }
  0x64   :  { %700 = vmatpush3.bf16.msra.mxu0 %v783_v45 }
  0x65   :  { %701 = vmatprep.subr.bf16.mxu0 %v784_v46 }
  0x66   :  { %380 = vmatpush1.bf16.msra.mxu1 %v748_v19 }
  0x67   :  { %381 = vmatprep.subr.bf16.mxu1 %v749_v20 }
  0x68   :  { %702 = vmatpush3.bf16.msra.mxu0 %v785_v47 }
  0x69   :  { %703 = vmatprep.subr.bf16.mxu0 %v786_v48 }
  0x6a   :  { %382 = vmatpush1.bf16.msra.mxu1 %v751_v21 }
  0x6b   :  { %383 = vmatprep.subr.bf16.mxu1 %v752_v22 }
  0x6c   :  { %704 = vmatpush3.bf16.msra.mxu0 %v787_v6 }
  0x6d   :  { %705 = vmatprep.subr.bf16.mxu0 %v788_v7 }
  0x6e   :  { %384 = vmatpush1.bf16.msra.mxu1 %v754_v23 }
  0x6f   :  { %385 = vmatprep.subr.bf16.mxu1 %v755_v24 }
  0x70   :  { %706 = vmatpush3.bf16.msra.mxu0 %v789_v8 }
  0x71   :  { %707 = vmatprep.subr.bf16.mxu0 %v790_v9 }
  0x72   :  { %386 = vmatpush1.bf16.msra.mxu1 %v757_v25 }
  0x73   :  { %387 = vmatprep.subr.bf16.mxu1 %v758_v26 }
  0x74   :  { %708 = vmatpush3.bf16.msra.mxu0 %v791_v10 }
  0x76   :  { %388 = vmatpush1.bf16.msra.mxu1 %v760_v27 }
  0x77   :  { %389 = vmatprep.subr.bf16.mxu1 %v761_v28 }
  0x7a   :  { %390 = vmatpush1.bf16.msra.mxu1 %v763_v29  ;;  %v667_v29 = vld [vmem:[%s1070_s6] ss:$0 sm:$0xff]  ;;  %s618_s6 = sshll.u32 %s923_s30, 4  ;;  %s619_s6 = int_to_ptr.vmem [resolvable:$true] %s618_s6 }
  0x7b   :  { %391 = vmatprep.subr.bf16.mxu1 %v764_v30  ;;  %s884_s8 = scalar_lea.vmem %s619_s6, 128  ;;  %p889_p5 = scmp.lt.s32.totalorder %s619_s6, %s619_s6 }
  0x7c   :  { %p885_p4 = scmp.ne.s32.totalorder %s619_s6, %s884_s8  ;;  %p890_p6 = scmp.lt.s32.totalorder %s884_s8, %s884_s8 }
  0x7e   :  { %392 = vmatpush1.bf16.msra.mxu1 %v766_v31  ;;  %p891_p7 = por %p890_p6, %p889_p5 }
  0x7f   :  { %393 = vmatprep.subr.bf16.mxu1 %v767_v32 }
  0x80   :  { %p892_p8 = pnand %p891_p7, %p885_p4 }
  0x82   :  { %394 = vmatpush1.bf16.msra.mxu1 %v769_v33 }
  0x83   :  { %395 = vmatprep.subr.bf16.mxu1 %v770_v34 }
  0x86   :  { %396 = vmatpush1.bf16.msra.mxu1 %v772_v35 }
  0x87   :  { %397 = vmatprep.subr.bf16.mxu1 %v773_v36 }
  0x8a   :  { %398 = vmatpush1.bf16.msra.mxu1 %v775_v37 }
 0x122   :  { %v148_v56 = vpop.f32.mrb[0].mxu0 }
 0x123   :  { %v149_v57 = vadd.f32 %v148_v56, %v93_v54  ;;  %v150_v58 = vpop.f32.mrb[1].mxu0 }
 0x124   :  { %v151_v59 = vadd.f32 %v150_v58, %v97_v55  ;;  %v152_v60 = vpop.f32.mrb[2].mxu0 }
 0x125   :  { %v153_v61 = vadd.f32 %v152_v60, %v93_v54  ;;  %v154_v62 = vpop.f32.mrb[3].mxu0  ;;  %v157_v0 = vmax.f32 %v149_v57, 0.0 }
 0x126   :  { %v155_v63 = vadd.f32 %v154_v62, %v97_v55  ;;  %v158_v2 = vmax.f32 %v151_v59, 0.0 }
 0x127   :  { %v159_v1 = vmax.f32 %v153_v61, 0.0 }
 0x128   :  { %v160_v3 = vmax.f32 %v155_v63, 0.0 }
 0x129   :  { %v161_v4 = vpack.c.bf16 %v159_v1, %v157_v0 }
 0x12a   :  { %v162_v5 = vpack.c.bf16 %v160_v3, %v158_v2 }
 0x12c   :  { %399 = vmatprep.mubr.bf16.mxu1 %v162_v5 }
 0x12d   :  { %400 = vmatmul.mubr.bf16.vlgmr.msra.gmra.mrb[0].mxu1 %v161_v4 }
 0x200   :  { %v401_v14 = vpop.f32.mrb[0].mxu1 }
 0x201   :  { %v402_v15 = vadd.f32 %v401_v14, %v200_v12  ;;  %v403_v16 = vpop.f32.mrb[1].mxu1 }
 0x202   :  { %v404_v17 = vadd.f32 %v403_v16, %v204_v13  ;;  %v405_v18 = vpop.f32.mrb[2].mxu1 }
 0x203   :  { %v406_v19 = vadd.f32 %v405_v18, %v200_v12  ;;  %v407_v20 = vpop.f32.mrb[3].mxu1  ;;  %v410_v22 = vmax.f32 %v402_v15, 0.0 }
 0x204   :  { %v408_v21 = vadd.f32 %v407_v20, %v204_v13  ;;  %v411_v24 = vmax.f32 %v404_v17, 0.0 }
 0x205   :  { %v412_v23 = vmax.f32 %v406_v19, 0.0 }
 0x206   :  { %v413_v25 = vmax.f32 %v408_v21, 0.0 }
 0x207   :  { %v414_v26 = vpack.c.bf16 %v412_v23, %v410_v22 }
 0x208   :  { %v415_v27 = vpack.c.bf16 %v413_v25, %v411_v24 }
 0x20a   :  { %583 = vmatprep.mubr.bf16.mxu0 %v415_v27 }
 0x20b   :  { %584 = vmatmul.mubr.bf16.vlgmr.msra.gmra.mrb[4].mxu0 %v414_v26 }
 0x2de   :  { %v709_v28 = vpop.f32.mrb[4].mxu0 }
 0x2df   :  { %v710_v30 = vpop.f32.mrb[5].mxu0 }
 0x2e0   :  { %v711_v31 = vadd.f32 %v710_v30, %v709_v28  ;;  %v712_v32 = vpop.f32.mrb[6].mxu0 }
 0x2e1   :  { %v713_v33 = vpop.f32.mrb[7].mxu0 }
 0x2e2   :  { %v586_v34 = vadd.f32 %v711_v31, %v667_v29  ;;  %v714_v35 = vadd.f32 %v713_v33, %v712_v32 }
 0x2e4   :  { %792 = vtanh.f32 %v586_v34  ;;  %v589_v36 = vadd.f32 %v714_v35, %v667_v29 }
 0x2e6   :  { %794 = vtanh.f32 %v589_v36 }
 0x2ee   :  { %v793_v37 = vpop.eup %792 }
 0x2ef   :  { %v594_v39 = vmul.f32 3.5, %v793_v37 }
 0x2f0   :  { %v795_v40 = vpop.eup %794 }
 0x2f1   :  { %v596_v41 = vadd.f32 -1.5, %v594_v39  ;;  %v595_v42 = vmul.f32 3.5, %v795_v40 }
 0x2f3   :  { %v597_v43 = vadd.f32 -1.5, %v595_v42  ;;  %v601_v44 = vsel %vm600_vm1, %v586_v34, %v596_v41 }
 0x2f5   :  { %v602_v45 = vsel %vm600_vm1, %v589_v36, %v597_v43 }
 0x2f6   :  { %v691_v46 = vpack.c.bf16 %v602_v45, %v601_v44 }
 0x2f8   :  { %692 = vst [vmem:[#allocation10] sm:$0xff] %v691_v46  }
 0x2f9   :  { %895 = shalt.err (!%p892_p8)
}
 0x2fa   :  { %s896_s11 = scalar_lea.hbm %s1071_s7, 128 }
 0x2fb   :  { %p897_p9 = scmp.ne.s32.totalorder %s1071_s7, %s896_s11  ;;  %p900_p10 = scmp.lt.u32.totalorder %s896_s11, %s1071_s7 }
 0x2fd   :  { %p902_p11 = pnand %p900_p10, %p897_p9 }
 0x2ff   :  { %905 = shalt.err (!%p902_p11)
}
 0x300   :  { %624 = dma.vmem_to_hbm [thread:$0]  %s619_s6, 128, %s1071_s7, [#allocation4], %s920_s3, %s920_s3, %s921_s13  }
 0x301   :  { %912 = dma.done.wait [#allocation4], 128  }
 0x302   :  { %913 = vsyncadd [#allocation4], 4294967168 }
 0x303   :  { %628 = vsyncpa [#allocation3], 1 }
 0x304   :  { %629 = vsyncpa [#allocation6], 1 }
 0x305   :  { %630 = vsyncpa [#allocation9], 1 }
 0x306   :  { %631 = vsyncpa [#allocation4], 1 }

</bundles_post_ra>
